<compile_context>
chip_gen: v5e
topology: v5e:2x2
jax: 0.10.0
libtpu: 0.0.40
codegen_flags: <defaults>
</compile_context>

<pallas_src>
import functools
import math

import jax
import jax.numpy as jnp
from jax import lax
from jax.experimental import pallas as pl
from jax.experimental.pallas import tpu as pltpu

LN_EPS = 1e-6  # ieps_ln_default


def _round_up(x, m):
    return ((x + m - 1) // m) * m


# ----------------------------------------------------------------------------
# Kernel
# ----------------------------------------------------------------------------
def _dual_lstm_ffn_kernel(x1_ref, x2_ref, op_ref, cell_ref,
                          w_ref, bf_ref, gt_ref, bet_ref, gh_ref, beh_ref,
                          wo_ref, bo_ref, out_ref,
                          *, osize, hsize, op_pad, nh_pad):
    wdt = w_ref.dtype
    # One MXU-depth-filling matmul over the concatenated activation streams.
    # icat is built in VMEM (no HBM concat); operands cast to the weight dtype.
    icat = jnp.concatenate(
        [x1_ref[...].astype(wdt), x2_ref[...].astype(wdt), op_ref[...].astype(wdt)],
        axis=-1)
    z = jnp.dot(icat, w_ref[...], preferred_element_type=jnp.float32) + bf_ref[...]

    nt_pad = 3 * op_pad

    # --- gate path: joint LayerNorm over the 3*osize REAL columns -----------
    t = z[:, :nt_pad]
    if op_pad == osize:
        mu = jnp.mean(t, axis=-1, keepdims=True)
        var = jnp.mean((t - mu) ** 2, axis=-1, keepdims=True)
    else:
        inv_n = 1.0 / (3 * osize)
        col = lax.broadcasted_iota(jnp.int32, t.shape, 1)
        real = ((col < osize)
                | ((col >= op_pad) & (col < op_pad + osize))
                | ((col >= 2 * op_pad) & (col < 2 * op_pad + osize)))
        # padded columns of z are exactly 0 (zero weight cols + zero bias),
        # so the plain sum already equals the sum over real columns.
        mu = jnp.sum(t, axis=-1, keepdims=True) * inv_n
        var = jnp.sum(jnp.where(real, (t - mu) ** 2, 0.0),
                      axis=-1, keepdims=True) * inv_n
    gates = jax.nn.sigmoid(
        (t - mu) * lax.rsqrt(var + LN_EPS) * gt_ref[...] + bet_ref[...])
    ig = gates[:, 0:op_pad]
    fg = gates[:, op_pad:2 * op_pad]
    og = gates[:, 2 * op_pad:]

    # --- hidden path: LayerNorm(hsize) -> ReLU -> Linear ---------------------
    h = z[:, nt_pad:]
    if nh_pad == hsize:
        mu_h = jnp.mean(h, axis=-1, keepdims=True)
        var_h = jnp.mean((h - mu_h) ** 2, axis=-1, keepdims=True)
    else:
        inv_h = 1.0 / hsize
        col_h = lax.broadcasted_iota(jnp.int32, h.shape, 1)
        real_h = col_h < hsize
        mu_h = jnp.sum(h, axis=-1, keepdims=True) * inv_h
        var_h = jnp.sum(jnp.where(real_h, (h - mu_h) ** 2, 0.0),
                        axis=-1, keepdims=True) * inv_h
    h = (h - mu_h) * lax.rsqrt(var_h + LN_EPS) * gh_ref[...] + beh_ref[...]
    h = jnp.maximum(h, 0.0)
    hidden = jnp.dot(h.astype(wo_ref.dtype), wo_ref[...],
                     preferred_element_type=jnp.float32) + bo_ref[...]

    # --- LSTM-style cell / output update, two lane-dense slice stores --------
    cell = cell_ref[...].astype(jnp.float32)
    new_cell = fg * cell + ig * hidden
    new_out = og * new_cell
    out_ref[:, :op_pad] = new_out.astype(out_ref.dtype)
    out_ref[:, op_pad:] = new_cell.astype(out_ref.dtype)


# ----------------------------------------------------------------------------
# Parameters
# ----------------------------------------------------------------------------
def init_params(key, isize, osize=None, hsize=None, dtype=jnp.float32):
    osize = isize if osize is None else osize
    hsize = 4 * osize if hsize is None else hsize
    in_dim = 2 * isize + osize
    ks = jax.random.split(key, 7)

    def lin(k, fan_in, fan_out):
        bound = 1.0 / math.sqrt(fan_in)
        kw, kb = jax.random.split(k)
        w = jax.random.uniform(kw, (fan_in, fan_out), dtype, -bound, bound)
        b = jax.random.uniform(kb, (1, fan_out), dtype, -bound, bound)
        return w, b

    wt, bt = lin(ks[0], in_dim, 3 * osize)        # self.trans
    wh, bh = lin(ks[1], in_dim, hsize)            # net[0]
    wo, bo = lin(ks[2], hsize, isize)             # net[3]
    # LayerNorm affine params (flattened (3, osize) and (hsize,)); randomized
    # slightly so tests exercise the affine path.
    gt = 1.0 + 0.1 * jax.random.normal(ks[3], (1, 3 * osize), dtype)
    bet = 0.1 * jax.random.normal(ks[4], (1, 3 * osize), dtype)
    gh = 1.0 + 0.1 * jax.random.normal(ks[5], (1, hsize), dtype)
    beh = 0.1 * jax.random.normal(ks[6], (1, hsize), dtype)
    return dict(wt=wt, bt=bt, gt=gt, bet=bet,
                wh=wh, bh=bh, gh=gh, beh=beh,
                wo=wo, bo=bo)


def prepare_params(params, compute_dtype=jnp.bfloat16):
    """One-time weight packing; call once and reuse across timesteps/calls."""
    if params.get("_prepared", False):
        return params
    wt, bt = params["wt"], params["bt"]
    wh, bh = params["wh"], params["bh"]
    wo, bo = params["wo"], params["bo"]
    gt, bet = params["gt"], params["bet"]
    gh, beh = params["gh"], params["beh"]

    in_dim, nt = wt.shape
    osize = nt // 3
    isize = (in_dim - osize) // 2
    hsize = wh.shape[-1]
    assert wo.shape == (hsize, isize) and isize == osize, \
        "cell update requires the net output width to equal osize (default osize=isize)"
    op_pad = _round_up(osize, 128)
    nh_pad = _round_up(hsize, 128)
    wdt = compute_dtype if compute_dtype is not None else wt.dtype

    def pad_gate(a, val):
        # (r, 3*osize) -> (r, 3*op_pad); each gate gets its own 128-aligned block.
        blocks = [jnp.pad(a[:, g * osize:(g + 1) * osize],
                          ((0, 0), (0, op_pad - osize)), constant_values=val)
                  for g in range(3)]
        return jnp.concatenate(blocks, axis=-1)

    def pad_cols(a, n_to, val=0.0):
        return jnp.pad(a, ((0, 0), (0, n_to - a.shape[-1])), constant_values=val)

    w_fused = jnp.concatenate([pad_gate(wt, 0.0), pad_cols(wh, nh_pad)],
                              axis=-1).astype(wdt)
    b_fused = jnp.concatenate([pad_gate(bt, 0.0), pad_cols(bh, nh_pad)],
                              axis=-1).astype(jnp.float32)
    return dict(
        _prepared=True,
        isize=isize, osize=osize, hsize=hsize, op_pad=op_pad, nh_pad=nh_pad,
        w_fused=w_fused, b_fused=b_fused,
        gt_pad=pad_gate(gt, 1.0).astype(jnp.float32),
        bet_pad=pad_gate(bet, 0.0).astype(jnp.float32),
        gh_pad=pad_cols(gh, nh_pad, 1.0).astype(jnp.float32),
        beh_pad=pad_cols(beh, nh_pad, 0.0).astype(jnp.float32),
        wo_pad=jnp.pad(wo, ((0, nh_pad - hsize), (0, op_pad - isize))).astype(wdt),
        bo_pad=pad_cols(bo, op_pad).astype(jnp.float32),
    )


# ----------------------------------------------------------------------------
# Wrapper
# ----------------------------------------------------------------------------
def dual_input_lstm_cell_ffn(input1, input2, state, params, *, tm=None,
                             compute_dtype=jnp.bfloat16):
    """Pallas-fused forward of DualInputLSTMCell4FFN (eval mode, dropout=0).

    input1, input2: (..., isize); state = (out, cell), each (..., osize).
    For a timestep loop, call prepare_params(params) once and pass the prepared
    dict; a raw params dict is auto-prepared (repacked) on every call.
    """
    p = params if params.get("_prepared", False) else prepare_params(
        params, compute_dtype=compute_dtype)
    out_prev, cell_prev = state
    isize, osize, hsize = p["isize"], p["osize"], p["hsize"]
    op_pad, nh_pad = p["op_pad"], p["nh_pad"]
    n_fused = 3 * op_pad + nh_pad
    K = 2 * isize + osize
    assert input1.shape[-1] == isize and input2.shape[-1] == isize
    assert out_prev.shape[-1] == osize and cell_prev.shape[-1] == osize

    lead = out_prev.shape[:-1]
    M = int(math.prod(lead)) if lead else 1
    out_dtype = out_prev.dtype
    wdt = p["w_fused"].dtype
    w_bytes = jnp.dtype(wdt).itemsize
    a_bytes = jnp.dtype(input1.dtype).itemsize

    # --- VMEM capacity & row-tile selection (leave headroom, esp. on v7x) ----
    try:
        vmem_cap = int(pltpu.get_tpu_info().vmem_capacity_bytes)
    except Exception:
        vmem_cap = 64 * 1024 * 1024
    vmem_ceiling = max(32 * 2**20, min(vmem_cap - 16 * 2**20, 100 * 2**20))
    if tm is None:
        tm = 512 if vmem_cap >= 96 * 2**20 else 256   # bigger tiles on 128 MiB parts

    def vmem_est(t):
        return int(
            (K * n_fused + nh_pad * op_pad) * w_bytes               # resident weights
            + 4 * (n_fused + 6 * op_pad + 2 * nh_pad + 3 * op_pad)  # biases / LN params
            + 2 * t * K * a_bytes                                   # x1,x2,op (dbl buf)
            + 2 * t * op_pad * jnp.dtype(cell_prev.dtype).itemsize  # cell (dbl buf)
            + 2 * t * 2 * op_pad * jnp.dtype(out_dtype).itemsize    # output (dbl buf)
            + t * K * w_bytes                                       # icat VMEM temp
            + 4 * t * (n_fused + 3 * op_pad + nh_pad + 3 * op_pad)  # f32 intermediates
        )

    while tm > 64 and vmem_est(tm) > vmem_ceiling:
        tm //= 2
    # TODO(synk): if the fused weight alone exceeds the VMEM ceiling (huge
    # osize/hsize on v7x's 64 MiB), add a K-reduction grid axis that streams
    # weight slabs into a f32 z scratch and finalizes LN/gates under pl.when.

    num_tiles = max(1, -(-M // tm))
    if num_tiles == 1 and M > 128:
        num_tiles = 2                      # keep both v7x TensorCores busy
    row_align = 8 if w_bytes >= 4 else 16  # bf16 packs 16 rows per sublane group
    tm_eff = max(row_align, _round_up(-(-M // num_tiles), row_align))
    m_pad = tm_eff * num_tiles

    def flat_rows(x, d):
        x = x.reshape(M, d)
        if m_pad != M:
            x = jnp.pad(x, ((0, m_pad - M), (0, 0)))
        return x

    x1 = flat_rows(input1, isize)
    x2 = flat_rows(input2, isize)
    opv = flat_rows(out_prev, osize)
    cl = flat_rows(cell_prev, osize)
    if op_pad != osize:
        cl = jnp.pad(cl, ((0, 0), (0, op_pad - osize)))

    row = lambda c: pl.BlockSpec((tm_eff, c), lambda i: (i, 0))
    # Grid-invariant operands: whole-array VMEM residency (single-buffered).
    resident = lambda: pl.BlockSpec(memory_space=pltpu.MemorySpace.VMEM)

    vmem_limit = int(min(vmem_ceiling, max(32 * 2**20, 2 * vmem_est(tm_eff))))

    kernel = functools.partial(_dual_lstm_ffn_kernel, osize=osize, hsize=hsize,
                               op_pad=op_pad, nh_pad=nh_pad)

    fused = pl.pallas_call(
        kernel,
        out_shape=jax.ShapeDtypeStruct((m_pad, 2 * op_pad), out_dtype),
        grid_spec=pltpu.PrefetchScalarGridSpec(
            num_scalar_prefetch=0,
            grid=(num_tiles,),
            in_specs=[
                row(isize),        # input1 rows
                row(isize),        # input2 rows
                row(osize),        # out_prev rows
                row(op_pad),       # cell rows (column padded to 128-aligned block)
                resident(),        # fused [gate blocks | hidden] weight
                resident(),        # fused bias
                resident(),        # gate LN gamma (padded layout)
                resident(),        # gate LN beta
                resident(),        # hidden LN gamma
                resident(),        # hidden LN beta
                resident(),        # wo (rows padded to nh_pad, cols to op_pad)
                resident(),        # bo
            ],
            out_specs=row(2 * op_pad),   # lane-dense (out || cell) slab
        ),
        compiler_params=pltpu.CompilerParams(
            dimension_semantics=("parallel",),
            vmem_limit_bytes=vmem_limit),
    )(x1, x2, opv, cl, p["w_fused"], p["b_fused"], p["gt_pad"], p["bet_pad"],
      p["gh_pad"], p["beh_pad"], p["wo_pad"], p["bo_pad"])

    new_out = fused[:M, :osize].reshape(*lead, osize)
    new_cell = fused[:M, op_pad:op_pad + osize].reshape(*lead, osize)
    return new_out, new_cell


# ----------------------------------------------------------------------------
# Pure-JAX reference (mirrors the PyTorch forward, f32)
# ----------------------------------------------------------------------------
def _layernorm_ref(x, gamma, beta, eps=LN_EPS):
    mu = jnp.mean(x, axis=-1, keepdims=True)
    var = jnp.mean((x - mu) ** 2, axis=-1, keepdims=True)
    return (x - mu) * lax.rsqrt(var + eps) * gamma + beta


def _reference(input1, input2, state, params):
    out_prev, cell_prev = state
    osize = out_prev.shape[-1]
    icat = jnp.concatenate([input1, input2, out_prev], axis=-1)
    t = icat @ params["wt"] + params["bt"][0]
    t = _layernorm_ref(t, params["gt"][0], params["bet"][0])
    gates = jax.nn.sigmoid(t)
    ig, fg, og = (gates[..., :osize], gates[..., osize:2 * osize],
                  gates[..., 2 * osize:])
    h = icat @ params["wh"] + params["bh"][0]
    h = _layernorm_ref(h, params["gh"][0], params["beh"][0])
    h = jnp.maximum(h, 0.0)
    hidden = h @ params["wo"] + params["bo"][0]
    cell = fg * cell_prev + ig * hidden
    out = og * cell
    return out, cell


if __name__ == "__main__":
    # --- test 1: tiny default config, f32 compute, single tile ----------------
    B, S, isize = 2, 8, 32          # osize=isize=32, hsize=128
    key = jax.random.PRNGKey(0)
    k1, k2, k3, k4, kp = jax.random.split(key, 5)
    input1 = jax.random.normal(k1, (B, S, isize), jnp.float32)
    input2 = jax.random.normal(k2, (B, S, isize), jnp.float32)
    out0 = jax.random.normal(k3, (B, S, isize), jnp.float32)
    cell0 = jax.random.normal(k4, (B, S, isize), jnp.float32)
    params = init_params(kp, isize)

    out_k, cell_k = dual_input_lstm_cell_ffn(
        input1, input2, (out0, cell0), params, compute_dtype=jnp.float32)
    jax.block_until_ready((out_k, cell_k))
    out_r, cell_r = _reference(input1, input2, (out0, cell0), params)
    assert out_k.shape == (B, S, isize) and cell_k.shape == (B, S, isize)
    assert jnp.allclose(out_k, out_r, atol=1e-4, rtol=1e-4)
    assert jnp.allclose(cell_k, cell_r, atol=1e-4, rtol=1e-4)

    # --- test 2: non-128-aligned osize/hsize, multi-tile grid w/ remainder, f32
    B2, S2, isize2 = 3, 50, 48      # osize=48, hsize=192 -> padded gate/hidden blocks
    key2 = jax.random.PRNGKey(1)
    j1, j2, j3, j4, jp = jax.random.split(key2, 5)
    i1 = jax.random.normal(j1, (B2, S2, isize2), jnp.float32)
    i2 = jax.random.normal(j2, (B2, S2, isize2), jnp.float32)
    o0 = jax.random.normal(j3, (B2, S2, isize2), jnp.float32)
    c0 = jax.random.normal(j4, (B2, S2, isize2), jnp.float32)
    params2 = init_params(jp, isize2)

    out_k2, cell_k2 = dual_input_lstm_cell_ffn(
        i1, i2, (o0, c0), params2, tm=64, compute_dtype=jnp.float32)
    jax.block_until_ready((out_k2, cell_k2))
    out_r2, cell_r2 = _reference(i1, i2, (o0, c0), params2)
    assert out_k2.shape == (B2, S2, isize2)
    assert jnp.allclose(out_k2, out_r2, atol=1e-3, rtol=1e-3)
    assert jnp.allclose(cell_k2, cell_r2, atol=1e-3, rtol=1e-3)

    # --- test 3: aligned sizes, default bf16 operands, prepared params reused -
    B3, S3, isize3 = 2, 96, 128     # M=192 -> at least 2 tiles (dual-TC split)
    key3 = jax.random.PRNGKey(2)
    q1, q2, q3, q4, qp = jax.random.split(key3, 5)
    i1_3 = jax.random.normal(q1, (B3, S3, isize3), jnp.float32)
    i2_3 = jax.random.normal(q2, (B3, S3, isize3), jnp.float32)
    o0_3 = jax.random.normal(q3, (B3, S3, isize3), jnp.float32)
    c0_3 = jax.random.normal(q4, (B3, S3, isize3), jnp.float32)
    params3 = init_params(qp, isize3)
    prepared = prepare_params(params3)               # packed once, reused below

    out_k3, cell_k3 = dual_input_lstm_cell_ffn(i1_3, i2_3, (o0_3, c0_3), prepared)
    jax.block_until_ready((out_k3, cell_k3))
    out_r3, cell_r3 = _reference(i1_3, i2_3, (o0_3, c0_3), params3)
    assert out_k3.shape == (B3, S3, isize3)
    assert jnp.allclose(out_k3, out_r3, atol=1e-1, rtol=1e-1)
    assert jnp.allclose(cell_k3, cell_r3, atol=1e-1, rtol=1e-1)

    # second "timestep" reusing the same prepared weights (no repacking)
    out_k4, cell_k4 = dual_input_lstm_cell_ffn(i1_3, i2_3, (out_k3, cell_k3), prepared)
    jax.block_until_ready((out_k4, cell_k4))
    assert bool(jnp.all(jnp.isfinite(out_k4))) and bool(jnp.all(jnp.isfinite(cell_k4)))

    print("KERNEL_OK")
</pallas_src>

<mosaic_0001>
module attributes {stable_mosaic.version = 11 : i64} {
  func.func @_dual_lstm_ffn_kernel(%arg0: i32, %arg1: memref<16x32xf32, #tpu.memory_space<vmem>>, %arg2: memref<16x32xf32, #tpu.memory_space<vmem>>, %arg3: memref<16x32xf32, #tpu.memory_space<vmem>>, %arg4: memref<16x128xf32, #tpu.memory_space<vmem>>, %arg5: memref<96x512xf32, #tpu.memory_space<vmem>>, %arg6: memref<1x512xf32, #tpu.memory_space<vmem>>, %arg7: memref<1x384xf32, #tpu.memory_space<vmem>>, %arg8: memref<1x384xf32, #tpu.memory_space<vmem>>, %arg9: memref<1x128xf32, #tpu.memory_space<vmem>>, %arg10: memref<1x128xf32, #tpu.memory_space<vmem>>, %arg11: memref<128x128xf32, #tpu.memory_space<vmem>>, %arg12: memref<1x128xf32, #tpu.memory_space<vmem>>, %arg13: memref<16x256xf32, #tpu.memory_space<vmem>>) attributes {dimension_semantics = [#tpu.dimension_semantics<parallel>], iteration_bounds = array<i64: 1>, scalar_prefetch = 0 : i64, scratch_operands = 0 : i64, tpu.core_type = #tpu.core_type<tc>, window_params = [{transform_indices = @transform_0, window_bounds = array<i64: 16, 32>}, {transform_indices = @transform_1, window_bounds = array<i64: 16, 32>}, {transform_indices = @transform_2, window_bounds = array<i64: 16, 32>}, {transform_indices = @transform_3, window_bounds = array<i64: 16, 128>}, {pipeline_mode = #tpu.pipeline_mode<synchronous>, transform_indices = @transform_4, window_bounds = array<i64: 96, 512>}, {pipeline_mode = #tpu.pipeline_mode<synchronous>, transform_indices = @transform_5, window_bounds = array<i64: 1, 512>}, {pipeline_mode = #tpu.pipeline_mode<synchronous>, transform_indices = @transform_6, window_bounds = array<i64: 1, 384>}, {pipeline_mode = #tpu.pipeline_mode<synchronous>, transform_indices = @transform_7, window_bounds = array<i64: 1, 384>}, {pipeline_mode = #tpu.pipeline_mode<synchronous>, transform_indices = @transform_8, window_bounds = array<i64: 1, 128>}, {pipeline_mode = #tpu.pipeline_mode<synchronous>, transform_indices = @transform_9, window_bounds = array<i64: 1, 128>}, {pipeline_mode = #tpu.pipeline_mode<synchronous>, transform_indices = @transform_10, window_bounds = array<i64: 128, 128>}, {pipeline_mode = #tpu.pipeline_mode<synchronous>, transform_indices = @transform_11, window_bounds = array<i64: 1, 128>}, {transform_indices = @transform_12, window_bounds = array<i64: 16, 256>}]} {
    %c0 = arith.constant 0 : index
    %c0_0 = arith.constant 0 : index
    %0 = vector.load %arg1[%c0, %c0_0] : memref<16x32xf32, #tpu.memory_space<vmem>>, vector<16x32xf32>
    %c0_1 = arith.constant 0 : index
    %c0_2 = arith.constant 0 : index
    %1 = vector.load %arg2[%c0_1, %c0_2] : memref<16x32xf32, #tpu.memory_space<vmem>>, vector<16x32xf32>
    %c0_3 = arith.constant 0 : index
    %c0_4 = arith.constant 0 : index
    %2 = vector.load %arg3[%c0_3, %c0_4] : memref<16x32xf32, #tpu.memory_space<vmem>>, vector<16x32xf32>
    %3 = tpu.concatenate %0, %1, %2 in 1 : vector<16x32xf32>, vector<16x32xf32>, vector<16x32xf32> -> vector<16x96xf32>
    %c0_5 = arith.constant 0 : index
    %c0_6 = arith.constant 0 : index
    %4 = vector.load %arg5[%c0_5, %c0_6] : memref<96x512xf32, #tpu.memory_space<vmem>>, vector<96x512xf32>
    %cst = arith.constant dense<0.000000e+00> : vector<16x512xf32>
    %5 = tpu.matmul %3, %4, %cst {dimension_numbers = #tpu.dot_dimension_numbers<[1], [0], [0], [1], [0, 0, 1, 1], [], []>} : vector<16x96xf32>, vector<96x512xf32>, vector<16x512xf32> -> vector<16x512xf32>
    %c0_7 = arith.constant 0 : index
    %c0_8 = arith.constant 0 : index
    %6 = vector.load %arg6[%c0_7, %c0_8] : memref<1x512xf32, #tpu.memory_space<vmem>>, vector<1x512xf32>
    %7 = vector.broadcast %6 : vector<1x512xf32> to vector<16x512xf32>
    %8 = arith.addf %5, %7 : vector<16x512xf32>
    %9 = vector.extract_strided_slice %8 {offsets = [0, 0], sizes = [16, 384], strides = [1, 1]} : vector<16x512xf32> to vector<16x384xf32>
    %10 = tpu.iota {dimensions = array<i32: 1>} : vector<16x384xi32>
    %c32_i32 = arith.constant 32 : i32
    %11 = vector.broadcast %c32_i32 : i32 to vector<16x384xi32>
    %12 = arith.cmpi slt, %10, %11 : vector<16x384xi32>
    %c128_i32 = arith.constant 128 : i32
    %13 = vector.broadcast %c128_i32 : i32 to vector<16x384xi32>
    %14 = arith.cmpi sge, %10, %13 : vector<16x384xi32>
    %c160_i32 = arith.constant 160 : i32
    %15 = vector.broadcast %c160_i32 : i32 to vector<16x384xi32>
    %16 = arith.cmpi slt, %10, %15 : vector<16x384xi32>
    %17 = arith.andi %14, %16 : vector<16x384xi1>
    %18 = arith.ori %12, %17 : vector<16x384xi1>
    %c256_i32 = arith.constant 256 : i32
    %19 = vector.broadcast %c256_i32 : i32 to vector<16x384xi32>
    %20 = arith.cmpi sge, %10, %19 : vector<16x384xi32>
    %c288_i32 = arith.constant 288 : i32
    %21 = vector.broadcast %c288_i32 : i32 to vector<16x384xi32>
    %22 = arith.cmpi slt, %10, %21 : vector<16x384xi32>
    %23 = arith.andi %20, %22 : vector<16x384xi1>
    %24 = arith.ori %18, %23 : vector<16x384xi1>
    %cst_9 = arith.constant dense<0.000000e+00> : vector<16xf32>
    %25 = vector.multi_reduction <add>, %9, %cst_9 [1] : vector<16x384xf32> to vector<16xf32>
    %26 = vector.shape_cast %25 : vector<16xf32> to vector<16x1xf32>
    %cst_10 = arith.constant 0.010416667 : f32
    %27 = vector.broadcast %cst_10 : f32 to vector<16x1xf32>
    %28 = arith.mulf %26, %27 : vector<16x1xf32>
    %29 = vector.broadcast %28 : vector<16x1xf32> to vector<16x384xf32>
    %30 = arith.subf %9, %29 : vector<16x384xf32>
    %31 = arith.mulf %30, %30 : vector<16x384xf32>
    %cst_11 = arith.constant 0.000000e+00 : f32
    %32 = vector.broadcast %cst_11 : f32 to vector<16x384xf32>
    %33 = arith.select %24, %31, %32 : vector<16x384xi1>, vector<16x384xf32>
    %cst_12 = arith.constant dense<0.000000e+00> : vector<16xf32>
    %34 = vector.multi_reduction <add>, %33, %cst_12 [1] : vector<16x384xf32> to vector<16xf32>
    %35 = vector.shape_cast %34 : vector<16xf32> to vector<16x1xf32>
    %cst_13 = arith.constant 0.010416667 : f32
    %36 = vector.broadcast %cst_13 : f32 to vector<16x1xf32>
    %37 = arith.mulf %35, %36 : vector<16x1xf32>
    %38 = vector.broadcast %28 : vector<16x1xf32> to vector<16x384xf32>
    %39 = arith.subf %9, %38 : vector<16x384xf32>
    %cst_14 = arith.constant 9.99999997E-7 : f32
    %40 = vector.broadcast %cst_14 : f32 to vector<16x1xf32>
    %41 = arith.addf %37, %40 : vector<16x1xf32>
    %42 = math.rsqrt %41 : vector<16x1xf32>
    %43 = vector.broadcast %42 : vector<16x1xf32> to vector<16x384xf32>
    %44 = arith.mulf %39, %43 : vector<16x384xf32>
    %c0_15 = arith.constant 0 : index
    %c0_16 = arith.constant 0 : index
    %45 = vector.load %arg7[%c0_15, %c0_16] : memref<1x384xf32, #tpu.memory_space<vmem>>, vector<1x384xf32>
    %46 = vector.broadcast %45 : vector<1x384xf32> to vector<16x384xf32>
    %47 = arith.mulf %44, %46 : vector<16x384xf32>
    %c0_17 = arith.constant 0 : index
    %c0_18 = arith.constant 0 : index
    %48 = vector.load %arg8[%c0_17, %c0_18] : memref<1x384xf32, #tpu.memory_space<vmem>>, vector<1x384xf32>
    %49 = vector.broadcast %48 : vector<1x384xf32> to vector<16x384xf32>
    %50 = arith.addf %47, %49 : vector<16x384xf32>
    %51 = arith.negf %50 : vector<16x384xf32>
    %52 = math.exp %51 : vector<16x384xf32>
    %cst_19 = arith.constant 1.000000e+00 : f32
    %53 = vector.broadcast %cst_19 : f32 to vector<16x384xf32>
    %54 = arith.addf %53, %52 : vector<16x384xf32>
    %55 = arith.divf %53, %54 : vector<16x384xf32>
    %56 = vector.extract_strided_slice %55 {offsets = [0, 0], sizes = [16, 128], strides = [1, 1]} : vector<16x384xf32> to vector<16x128xf32>
    %57 = vector.extract_strided_slice %55 {offsets = [0, 128], sizes = [16, 128], strides = [1, 1]} : vector<16x384xf32> to vector<16x128xf32>
    %58 = vector.extract_strided_slice %55 {offsets = [0, 256], sizes = [16, 128], strides = [1, 1]} : vector<16x384xf32> to vector<16x128xf32>
    %59 = vector.extract_strided_slice %8 {offsets = [0, 384], sizes = [16, 128], strides = [1, 1]} : vector<16x512xf32> to vector<16x128xf32>
    %cst_20 = arith.constant dense<0.000000e+00> : vector<16xf32>
    %60 = vector.multi_reduction <add>, %59, %cst_20 [1] : vector<16x128xf32> to vector<16xf32>
    %61 = vector.shape_cast %60 : vector<16xf32> to vector<16x1xf32>
    %cst_21 = arith.constant 1.280000e+02 : f32
    %62 = vector.broadcast %cst_21 : f32 to vector<16x1xf32>
    %63 = arith.divf %61, %62 : vector<16x1xf32>
    %64 = vector.broadcast %63 : vector<16x1xf32> to vector<16x128xf32>
    %65 = arith.subf %59, %64 : vector<16x128xf32>
    %66 = arith.mulf %65, %65 : vector<16x128xf32>
    %cst_22 = arith.constant dense<0.000000e+00> : vector<16xf32>
    %67 = vector.multi_reduction <add>, %66, %cst_22 [1] : vector<16x128xf32> to vector<16xf32>
    %68 = vector.shape_cast %67 : vector<16xf32> to vector<16x1xf32>
    %cst_23 = arith.constant 1.280000e+02 : f32
    %69 = vector.broadcast %cst_23 : f32 to vector<16x1xf32>
    %70 = arith.divf %68, %69 : vector<16x1xf32>
    %71 = vector.broadcast %63 : vector<16x1xf32> to vector<16x128xf32>
    %72 = arith.subf %59, %71 : vector<16x128xf32>
    %cst_24 = arith.constant 9.99999997E-7 : f32
    %73 = vector.broadcast %cst_24 : f32 to vector<16x1xf32>
    %74 = arith.addf %70, %73 : vector<16x1xf32>
    %75 = math.rsqrt %74 : vector<16x1xf32>
    %76 = vector.broadcast %75 : vector<16x1xf32> to vector<16x128xf32>
    %77 = arith.mulf %72, %76 : vector<16x128xf32>
    %c0_25 = arith.constant 0 : index
    %c0_26 = arith.constant 0 : index
    %78 = vector.load %arg9[%c0_25, %c0_26] : memref<1x128xf32, #tpu.memory_space<vmem>>, vector<1x128xf32>
    %79 = vector.broadcast %78 : vector<1x128xf32> to vector<16x128xf32>
    %80 = arith.mulf %77, %79 : vector<16x128xf32>
    %c0_27 = arith.constant 0 : index
    %c0_28 = arith.constant 0 : index
    %81 = vector.load %arg10[%c0_27, %c0_28] : memref<1x128xf32, #tpu.memory_space<vmem>>, vector<1x128xf32>
    %82 = vector.broadcast %81 : vector<1x128xf32> to vector<16x128xf32>
    %83 = arith.addf %80, %82 : vector<16x128xf32>
    %cst_29 = arith.constant 0.000000e+00 : f32
    %84 = vector.broadcast %cst_29 : f32 to vector<16x128xf32>
    %85 = arith.maximumf %83, %84 : vector<16x128xf32>
    %c0_30 = arith.constant 0 : index
    %c0_31 = arith.constant 0 : index
    %86 = vector.load %arg11[%c0_30, %c0_31] : memref<128x128xf32, #tpu.memory_space<vmem>>, vector<128x128xf32>
    %cst_32 = arith.constant dense<0.000000e+00> : vector<16x128xf32>
    %87 = tpu.matmul %85, %86, %cst_32 {dimension_numbers = #tpu.dot_dimension_numbers<[1], [0], [0], [1], [0, 0, 1, 1], [], []>} : vector<16x128xf32>, vector<128x128xf32>, vector<16x128xf32> -> vector<16x128xf32>
    %c0_33 = arith.constant 0 : index
    %c0_34 = arith.constant 0 : index
    %88 = vector.load %arg12[%c0_33, %c0_34] : memref<1x128xf32, #tpu.memory_space<vmem>>, vector<1x128xf32>
    %89 = vector.broadcast %88 : vector<1x128xf32> to vector<16x128xf32>
    %90 = arith.addf %87, %89 : vector<16x128xf32>
    %c0_35 = arith.constant 0 : index
    %c0_36 = arith.constant 0 : index
    %91 = vector.load %arg4[%c0_35, %c0_36] : memref<16x128xf32, #tpu.memory_space<vmem>>, vector<16x128xf32>
    %92 = arith.mulf %57, %91 : vector<16x128xf32>
    %93 = arith.mulf %56, %90 : vector<16x128xf32>
    %94 = arith.addf %92, %93 : vector<16x128xf32>
    %95 = arith.mulf %58, %94 : vector<16x128xf32>
    %c0_37 = arith.constant 0 : index
    %c0_38 = arith.constant 0 : index
    %96 = vector.load %arg13[%c0_37, %c0_38] : memref<16x256xf32, #tpu.memory_space<vmem>>, vector<16x128xf32>
    tpu.vector_store %arg13[%c0_37, %c0_38], %95 {strides = array<i32>} : memref<16x256xf32, #tpu.memory_space<vmem>>, vector<16x128xf32>,
    %c0_39 = arith.constant 0 : index
    %c128 = arith.constant 128 : index
    %97 = vector.load %arg13[%c0_39, %c128] : memref<16x256xf32, #tpu.memory_space<vmem>>, vector<16x128xf32>
    tpu.vector_store %arg13[%c0_39, %c128], %94 {strides = array<i32>} : memref<16x256xf32, #tpu.memory_space<vmem>>, vector<16x128xf32>,
    return
  }
  func.func @transform_0(%arg0: i32) -> (i32, i32) {
    %c0_i32 = arith.constant 0 : i32
    %c0_i32_0 = arith.constant 0 : i32
    return %arg0, %c0_i32 : i32, i32
  }
  func.func @transform_1(%arg0: i32) -> (i32, i32) {
    %c0_i32 = arith.constant 0 : i32
    %c0_i32_0 = arith.constant 0 : i32
    return %arg0, %c0_i32 : i32, i32
  }
  func.func @transform_2(%arg0: i32) -> (i32, i32) {
    %c0_i32 = arith.constant 0 : i32
    %c0_i32_0 = arith.constant 0 : i32
    return %arg0, %c0_i32 : i32, i32
  }
  func.func @transform_3(%arg0: i32) -> (i32, i32) {
    %c0_i32 = arith.constant 0 : i32
    %c0_i32_0 = arith.constant 0 : i32
    return %arg0, %c0_i32 : i32, i32
  }
  func.func @transform_4(%arg0: i32) -> (i32, i32) {
    %c0_i32 = arith.constant 0 : i32
    %c0_i32_0 = arith.constant 0 : i32
    %c0_i32_1 = arith.constant 0 : i32
    return %c0_i32, %c0_i32_0 : i32, i32
  }
  func.func @transform_5(%arg0: i32) -> (i32, i32) {
    %c0_i32 = arith.constant 0 : i32
    %c0_i32_0 = arith.constant 0 : i32
    %c0_i32_1 = arith.constant 0 : i32
    return %c0_i32, %c0_i32_0 : i32, i32
  }
  func.func @transform_6(%arg0: i32) -> (i32, i32) {
    %c0_i32 = arith.constant 0 : i32
    %c0_i32_0 = arith.constant 0 : i32
    %c0_i32_1 = arith.constant 0 : i32
    return %c0_i32, %c0_i32_0 : i32, i32
  }
  func.func @transform_7(%arg0: i32) -> (i32, i32) {
    %c0_i32 = arith.constant 0 : i32
    %c0_i32_0 = arith.constant 0 : i32
    %c0_i32_1 = arith.constant 0 : i32
    return %c0_i32, %c0_i32_0 : i32, i32
  }
  func.func @transform_8(%arg0: i32) -> (i32, i32) {
    %c0_i32 = arith.constant 0 : i32
    %c0_i32_0 = arith.constant 0 : i32
    %c0_i32_1 = arith.constant 0 : i32
    return %c0_i32, %c0_i32_0 : i32, i32
  }
  func.func @transform_9(%arg0: i32) -> (i32, i32) {
    %c0_i32 = arith.constant 0 : i32
    %c0_i32_0 = arith.constant 0 : i32
    %c0_i32_1 = arith.constant 0 : i32
    return %c0_i32, %c0_i32_0 : i32, i32
  }
  func.func @transform_10(%arg0: i32) -> (i32, i32) {
    %c0_i32 = arith.constant 0 : i32
    %c0_i32_0 = arith.constant 0 : i32
    %c0_i32_1 = arith.constant 0 : i32
    return %c0_i32, %c0_i32_0 : i32, i32
  }
  func.func @transform_11(%arg0: i32) -> (i32, i32) {
    %c0_i32 = arith.constant 0 : i32
    %c0_i32_0 = arith.constant 0 : i32
    %c0_i32_1 = arith.constant 0 : i32
    return %c0_i32, %c0_i32_0 : i32, i32
  }
  func.func @transform_12(%arg0: i32) -> (i32, i32) {
    %c0_i32 = arith.constant 0 : i32
    %c0_i32_0 = arith.constant 0 : i32
    return %arg0, %c0_i32 : i32, i32
  }
}

</mosaic_0001>

<bundles_post_ra>
// kernel: tpu_custom_call.1
= control target key start
LH: loop header
LB: loop body
LE: loop exit
PB: predicated region body
PF: predicated region fallthrough
CT: control target
= control target key end

     0   :  { %17 = vsyncpa [#allocation3], 0  ;;  %s1310_s0 = inlined_call_operand.hbm [shape: f32[16,32], index: 0, kind: input, shape index: {}]   ;;  %s1311_s1 = inlined_call_operand.hbm [shape: f32[16,32], index: 1, kind: input, shape index: {}]   ;;  %s1312_s2 = inlined_call_operand.hbm [shape: f32[16,32], index: 2, kind: input, shape index: {}]   ;;  %s1313_s3 = inlined_call_operand.hbm [shape: f32[16,128], index: 3, kind: input, shape index: {}]   ;;  %s1314_s4 = inlined_call_operand.hbm [shape: f32[96,512], index: 4, kind: input, shape index: {}]   ;;  %s1315_s5 = inlined_call_operand.vmem [shape: f32[1,512], index: 5, kind: input, shape index: {}]   ;;  %s1316_s6 = inlined_call_operand.hbm [shape: f32[1,384], index: 6, kind: input, shape index: {}]   ;;  %s1317_s7 = inlined_call_operand.hbm [shape: f32[1,384], index: 7, kind: input, shape index: {}]   ;;  %s1318_s8 = inlined_call_operand.vmem [shape: f32[1,128], index: 8, kind: input, shape index: {}]   ;;  %s1319_s9 = inlined_call_operand.vmem [shape: f32[1,128], index: 9, kind: input, shape index: {}]   ;;  %s1320_s10 = inlined_call_operand.hbm [shape: f32[128,128], index: 10, kind: input, shape index: {}]   ;;  %s1321_s11 = inlined_call_operand.vmem [shape: f32[1,128], index: 11, kind: input, shape index: {}]   ;;  %s1322_s12 = inlined_call_operand.hbm [shape: f32[16,256], index: 12, kind: output, shape index: {}]  }
   0x1   :  { %18 = vsyncpa [#allocation6], 0 }
   0x2   :  { %19 = vsyncpa [#allocation9], 0 }
   0x3   :  { %20 = vsyncpa [#allocation12], 0 }
   0x4   :  { %21 = vsyncpa [#allocation15], 0 }
   0x5   :  { %22 = vsyncpa [#allocation4], 0  ;;  %s40_s23 = sshll.u32 %s1311_s1, 4  ;;  %s1024_s24 = smov [#allocation5]   ;;  %s41_s23 = int_to_ptr.hbm [resolvable:$true] %s40_s23 }
   0x6   :  { %s42_s25 = sshll.u32 %s1024_s24, 4  ;;  %s66_s28 = sshll.u32 %s1313_s3, 4  ;;  %s43_s25 = int_to_ptr.vmem [resolvable:$true] %s42_s25  ;;  %s67_s28 = int_to_ptr.hbm [resolvable:$true] %s66_s28 }
   0x7   :  { %s1025_s29 = smov 128   ;;  %s1026_s30 = smov 8  }
   0x8   :  { %48 = dma.hbm_to_vmem [thread:$0]  %s41_s23, 256, %s43_s25, [#allocation6], %s1025_s29, %s1025_s29, %s1026_s30  }
   0x9   :  { %s1027_s13 = smov [#allocation8]   ;;  %s95_s1 = sshll.u32 %s1316_s6, 4  ;;  %s96_s1 = int_to_ptr.hbm [resolvable:$true] %s95_s1 }
   0xa   :  { %s68_s14 = sshll.u32 %s1027_s13, 4  ;;  %s27_s18 = sshll.u32 %s1310_s0, 4  ;;  %s69_s14 = int_to_ptr.vmem [resolvable:$true] %s68_s14  ;;  %s28_s18 = int_to_ptr.hbm [resolvable:$true] %s27_s18 }
   0xb   :  { %74 = dma.hbm_to_vmem [thread:$0]  %s67_s28, 256, %s69_s14, [#allocation9], %s1025_s29, %s1025_s29, %s1026_s30  }
   0xc   :  { %s1028_s19 = smov [#allocation11]   ;;  %s1029_s21 = smov [#allocation2]  }
   0xd   :  { %s97_s20 = sshll.u32 %s1028_s19, 4  ;;  %s29_s22 = sshll.u32 %s1029_s21, 4  ;;  %s98_s20 = int_to_ptr.vmem [resolvable:$true] %s97_s20  ;;  %s30_s22 = int_to_ptr.vmem [resolvable:$true] %s29_s22 }
   0xe   :  { %100 = dma.hbm_to_vmem [thread:$0]  %s96_s1, 48, %s98_s20, [#allocation12]  }
   0xf   :  { %s53_s6 = sshll.u32 %s1312_s2, 4  ;;  %s79_s0 = sshll.u32 %s1314_s4, 4  ;;  %s54_s6 = int_to_ptr.hbm [resolvable:$true] %s53_s6  ;;  %s80_s0 = int_to_ptr.hbm [resolvable:$true] %s79_s0 }
  0x10   :  { %35 = dma.hbm_to_vmem [thread:$0]  %s28_s18, 256, %s30_s22, [#allocation3], %s1025_s29, %s1025_s29, %s1026_s30  }
  0x11   :  { %s1030_s27 = smov [#allocation7]   ;;  %s1031_s13 = smov [#allocation10]  }
  0x12   :  { %s55_s28 = sshll.u32 %s1030_s27, 4  ;;  %s81_s2 = sshll.u32 %s1031_s13, 4  ;;  %s56_s28 = int_to_ptr.vmem [resolvable:$true] %s55_s28  ;;  %s82_s2 = int_to_ptr.vmem [resolvable:$true] %s81_s2 }
  0x13   :  { %61 = dma.hbm_to_vmem [thread:$0]  %s54_s6, 256, %s56_s28, [#allocation6], %s1025_s29, %s1025_s29, %s1026_s30  }
  0x14   :  { %s1032_s14 = smov 512   ;;  %s1033_s15 = smov 32  }
  0x15   :  { %87 = dma.hbm_to_vmem [thread:$0]  %s80_s0, 6144, %s82_s2, [#allocation9], %s1032_s14, %s1032_s14, %s1033_s15  }
  0x16   :  { %s106_s3 = sshll.u32 %s1317_s7, 4  ;;  %s1034_s4 = smov [#allocation13]   ;;  %s107_s3 = int_to_ptr.hbm [resolvable:$true] %s106_s3 }
  0x17   :  { %s108_s17 = sshll.u32 %s1034_s4, 4  ;;  %s120_s20 = sshll.u32 %s1320_s10, 4  ;;  %s109_s17 = int_to_ptr.vmem [resolvable:$true] %s108_s17  ;;  %s121_s20 = int_to_ptr.hbm [resolvable:$true] %s120_s20 }
  0x18   :  { %111 = dma.hbm_to_vmem [thread:$0]  %s107_s3, 48, %s109_s17, [#allocation12]  }
  0x19   :  { %s1035_s21 = smov [#allocation14]  }
  0x1a   :  { %s122_s22 = sshll.u32 %s1035_s21, 4  ;;  %s123_s22 = int_to_ptr.vmem [resolvable:$true] %s122_s22 }
  0x1b   :  { %128 = dma.hbm_to_vmem [thread:$0]  %s121_s20, 2048, %s123_s22, [#allocation15], %s1025_s29, %s1025_s29, %s1026_s30  }
  0x1c   :  { %1012 = dma.done.wait [#allocation3], 256  }
  0x1d   :  { %1013 = vsyncadd [#allocation3], 4294967040 }
  0x1e   :  { %1014 = dma.done.wait [#allocation6], 512  }
  0x1f   :  { %1015 = vsyncadd [#allocation6], 4294966784 }
  0x20   :  { %1016 = dma.done.wait [#allocation9], 6400  }
  0x21   :  { %1017 = vsyncadd [#allocation9], 4294960896 }
  0x22   :  { %1018 = dma.done.wait [#allocation12], 96  }
  0x23   :  { %1019 = vsyncadd [#allocation12], 4294967200 }
  0x24   :  { %1020 = dma.done.wait [#allocation15], 2048  }
  0x25   :  { %1021 = vsyncadd [#allocation15], 4294965248  ;;  %v165_v0 = vld [vmem:[#allocation5] sm:$0xff]  ;;  %v166_v1 = vld [vmem:[#allocation5 + $0x8] sm:$0xff]  ;;  %s1036_s7 = smov 64   ;;  %vm185_vm0 = vcmask 261120  }
  0x26   :  { %171 = vrot.lane.b32.xlu0 %v165_v0, %s1033_s15  ;;  %173 = vrot.lane.b32.xlu1 %v166_v1, %s1033_s15  ;;  %v235_v2 = vld [vmem:[#allocation10 + $0x160] sm:$0xff]  ;;  %v237_v4 = vld [vmem:[#allocation10 + $0x170] sm:$0xff]  ;;  %v238_v6 = vld [vmem:[#allocation10 + $0x178] sm:$0xff]  ;;  %vm188_vm1 = vcmask 523264   ;;  %vm249_vm2 = vcmask 785408   ;;  %s711_s0 = sshll.u32 %s1322_s12, 4  ;;  %s712_s0 = int_to_ptr.hbm [resolvable:$true] %s711_s0 }
  0x27   :  { %v231_v3 = vld [vmem:[#allocation10 + $0x140] sm:$0xff]  ;;  %260 = vmatpush.msra.mxu1 %v235_v2  ;;  %306 = vmatpush.msra.mxu2 %v237_v4  ;;  %v233_v7 = vld [vmem:[#allocation10 + $0x150] sm:$0xff]  ;;  %v234_v8 = vld [vmem:[#allocation10 + $0x158] sm:$0xff]  ;;  %s1039_s27 = smov 256   ;;  %s1040_s28 = smov 16  }
  0x28   :  { %v227_v5 = vld [vmem:[#allocation10 + $0x120] sm:$0xff]  ;;  %329 = vmatpush.msra.mxu3 %v238_v6  ;;  %v229_v9 = vld [vmem:[#allocation10 + $0x130] sm:$0xff]  ;;  %v230_v11 = vld [vmem:[#allocation10 + $0x138] sm:$0xff] }
  0x29   :  { %261 = vmatpush.msra.mxu1 %v231_v3  ;;  %v223_v10 = vld [vmem:[#allocation10 + $0x100] sm:$0xff]  ;;  %307 = vmatpush.msra.mxu2 %v233_v7  ;;  %v168_v13 = vld [vmem:[#allocation7 + $0x8] sm:$0xff]  ;;  %v225_v15 = vld [vmem:[#allocation10 + $0x110] sm:$0xff] }
  0x2a   :  { %v167_v12 = vld [vmem:[#allocation7] sm:$0xff]  ;;  %330 = vmatpush.msra.mxu3 %v234_v8  ;;  %v226_v16 = vld [vmem:[#allocation10 + $0x118] sm:$0xff]  ;;  %v221_v18 = vld [vmem:[#allocation10 + $0xf0] sm:$0xff] }
  0x2b   :  { %262 = vmatpush.msra.mxu1 %v227_v5  ;;  %v219_v14 = vld [vmem:[#allocation10 + $0xe0] sm:$0xff]  ;;  %308 = vmatpush.msra.mxu2 %v229_v9  ;;  %v222_v19 = vld [vmem:[#allocation10 + $0xf8] sm:$0xff]  ;;  %v217_v21 = vld [vmem:[#allocation10 + $0xd0] sm:$0xff] }
  0x2c   :  { %331 = vmatpush.msra.mxu3 %v230_v11  ;;  %v215_v17 = vld [vmem:[#allocation10 + $0xc0] sm:$0xff]  ;;  %v218_v22 = vld [vmem:[#allocation10 + $0xd8] sm:$0xff]  ;;  %v213_v24 = vld [vmem:[#allocation10 + $0xb0] sm:$0xff] }
  0x2d   :  { %263 = vmatpush.msra.mxu1 %v223_v10  ;;  %309 = vmatpush.msra.mxu2 %v225_v15  ;;  %v211_v20 = vld [vmem:[#allocation10 + $0xa0] sm:$0xff]  ;;  %v214_v25 = vld [vmem:[#allocation10 + $0xb8] sm:$0xff]  ;;  %v209_v29 = vld [vmem:[#allocation10 + $0x90] sm:$0xff] }
  0x2e   :  { %179 = vrot.lane.b32.xlu0 %v167_v12, %s1036_s7  ;;  %181 = vrot.lane.b32.xlu1 %v168_v13, %s1036_s7  ;;  %v207_v23 = vld [vmem:[#allocation10 + $0x80] sm:$0xff]  ;;  %v210_v30 = vld [vmem:[#allocation10 + $0x98] sm:$0xff]  ;;  %v236_v32 = vld [vmem:[#allocation10 + $0x168] sm:$0xff] }
  0x2f   :  { %264 = vmatpush.msra.mxu1 %v219_v14  ;;  %332 = vmatpush.msra.mxu3 %v226_v16  ;;  %v203_v26 = vld [vmem:[#allocation10 + $0x60] sm:$0xff]  ;;  %v205_v33 = vld [vmem:[#allocation10 + $0x70] sm:$0xff]  ;;  %v206_v34 = vld [vmem:[#allocation10 + $0x78] sm:$0xff] }
  0x30   :  { %310 = vmatpush.msra.mxu2 %v221_v18  ;;  %v199_v27 = vld [vmem:[#allocation10 + $0x40] sm:$0xff]  ;;  %v232_v35 = vld [vmem:[#allocation10 + $0x148] sm:$0xff]  ;;  %v201_v36 = vld [vmem:[#allocation10 + $0x50] sm:$0xff] }
  0x31   :  { %265 = vmatpush.msra.mxu1 %v215_v17  ;;  %333 = vmatpush.msra.mxu3 %v222_v19  ;;  %v195_v28 = vld [vmem:[#allocation10 + $0x20] sm:$0xff]  ;;  %v202_v37 = vld [vmem:[#allocation10 + $0x58] sm:$0xff]  ;;  %v228_v38 = vld [vmem:[#allocation10 + $0x128] sm:$0xff] }
  0x32   :  { %311 = vmatpush.msra.mxu2 %v217_v21  ;;  %v191_v31 = vld [vmem:[#allocation10] sm:$0xff]  ;;  %v197_v39 = vld [vmem:[#allocation10 + $0x30] sm:$0xff]  ;;  %v198_v40 = vld [vmem:[#allocation10 + $0x38] sm:$0xff] }
  0x33   :  { %266 = vmatpush.msra.mxu1 %v211_v20  ;;  %334 = vmatpush.msra.mxu3 %v218_v22  ;;  %v224_v41 = vld [vmem:[#allocation10 + $0x108] sm:$0xff]  ;;  %v193_v42 = vld [vmem:[#allocation10 + $0x10] sm:$0xff]  ;;  %v194_v43 = vld [vmem:[#allocation10 + $0x18] sm:$0xff] }
  0x34   :  { %312 = vmatpush.msra.mxu2 %v213_v24  ;;  %v220_v44 = vld [vmem:[#allocation10 + $0xe8] sm:$0xff]  ;;  %v163_v54 = vld [vmem:[#allocation2] sm:$0xff] }
  0x35   :  { %267 = vmatpush.msra.mxu1 %v207_v23  ;;  %335 = vmatpush.msra.mxu3 %v214_v25  ;;  %v216_v45 = vld [vmem:[#allocation10 + $0xc8] sm:$0xff]  ;;  %v239_v63 = vld [vmem:[%s1315_s5] sm:$0xf]  ;;  %v1037_v23 = vmov 128.0  }
  0x36   :  { %313 = vmatpush.msra.mxu2 %v209_v29  ;;  %v212_v46 = vld [vmem:[#allocation10 + $0xa8] sm:$0xff]  ;;  %v244_v0 = vperm.slane %v239_v63, 3  ;;  %v242_v4 = vperm.slane %v239_v63, 1  ;;  %v241_v5 = vperm.slane %v239_v63, 0  ;;  %v243_v12 = vperm.slane %v239_v63, 2 }
  0x37   :  { %268 = vmatpush.msra.mxu1 %v203_v26  ;;  %336 = vmatpush.msra.mxu3 %v210_v30  ;;  %v208_v47 = vld [vmem:[#allocation10 + $0x88] sm:$0xff]  ;;  %762 = vrcp.f32 %v1037_v23 }
  0x38   :  { %314 = vmatpush.msra.mxu2 %v205_v33  ;;  %v204_v48 = vld [vmem:[#allocation10 + $0x68] sm:$0xff]  ;;  %v663_v33 = vld [vmem:[#allocation14 + $0x78] sm:$0xff] }
  0x39   :  { %269 = vmatpush.msra.mxu1 %v199_v27  ;;  %337 = vmatpush.msra.mxu3 %v206_v34  ;;  %v200_v49 = vld [vmem:[#allocation10 + $0x48] sm:$0xff] }
  0x3a   :  { %315 = vmatpush.msra.mxu2 %v201_v36  ;;  %v196_v50 = vld [vmem:[#allocation10 + $0x28] sm:$0xff]  ;;  %668 = vmatpush.msra.mxu0 %v663_v33  ;;  %v348_v36 = vlaneseq }
  0x3b   :  { %270 = vmatpush.msra.mxu1 %v195_v28  ;;  %338 = vmatpush.msra.mxu3 %v202_v37  ;;  %v192_v51 = vld [vmem:[#allocation10 + $0x8] sm:$0xff] }
  0x3c   :  { %316 = vmatpush.msra.mxu2 %v197_v39  ;;  %v164_v58 = vld [vmem:[#allocation2 + $0x8] sm:$0xff]  ;;  %v349_v39 = vand.u32 127, %v348_v36  ;;  %v759_v36 = vld [vmem:[%s1318_s8] ss:$0 sm:$0xff] }
  0x3d   :  { %271 = vmatpush.msra.mxu1 %v191_v31  ;;  %339 = vmatpush.msra.mxu3 %v198_v40  ;;  %v763_v24 = vpop.eup %762 }
  0x3e   :  { %317 = vmatpush.msra.mxu2 %v193_v42  ;;  %v592_v25 = vmul.f32 128.0, %v763_v24  ;;  %vm596_vm3 = vweird.f32 %v763_v24  ;;  %v350_v42 = vadd.s32 128, %v349_v39  ;;  %vm352_vm4 = vcmp.lt.s32.totalorder %v349_v39, 32 }
  0x3f   :  { %283 = vmatpush.msrb.mxu1 %v236_v32  ;;  %340 = vmatpush.msra.mxu3 %v194_v43 }
  0x40   :  { %v593_v26 = vsub.f32 1.0, %v592_v25  ;;  %vm359_vm5 = vcmp.lt.s32.totalorder %v350_v42, 160 }
  0x41   :  { %284 = vmatpush.msrb.mxu1 %v232_v35 }
  0x42   :  { %v594_v27 = vmul.f32 %v763_v24, %v593_v26 }
  0x43   :  { %285 = vmatpush.msrb.mxu1 %v228_v38 }
  0x44   :  { %v595_v28 = vadd.f32 %v763_v24, %v594_v27 }
  0x45   :  { %286 = vmatpush.msrb.mxu1 %v224_v41 }
  0x46   :  { %v1148_v29 = vsel %vm596_vm3, %v763_v24, %v595_v28 }
  0x47   :  { %287 = vmatpush.msrb.mxu1 %v220_v44  ;;  %v351_v44 = vadd.s32 256, %v349_v39 }
  0x49   :  { %288 = vmatpush.msrb.mxu1 %v216_v45  ;;  %vm372_vm6 = vcmp.lt.s32.totalorder %v351_v44, 288 }
  0x4b   :  { %289 = vmatpush.msrb.mxu1 %v212_v46 }
  0x4d   :  { %290 = vmatpush.msrb.mxu1 %v208_v47 }
  0x4f   :  { %291 = vmatpush.msrb.mxu1 %v204_v48 }
  0x51   :  { %292 = vmatpush.msrb.mxu1 %v200_v49 }
  0x53   :  { %293 = vmatpush.msrb.mxu1 %v196_v50 }
  0x55   :  { %294 = vmatpush.msrb.mxu1 %v192_v51 }
  0x98   :  { %v172_v52 = vpop.permute.xlu0 %171  ;;  %v174_v53 = vpop.permute.xlu1 %173 }
  0x99   :  { %v186_v55 = vsel %vm185_vm0, %v163_v54, %v172_v52  ;;  %v187_v59 = vsel %vm185_vm0, %v164_v58, %v174_v53 }
  0xa0   :  { %v180_v56 = vpop.permute.xlu0 %179  ;;  %v182_v60 = vpop.permute.xlu1 %181 }
  0xa1   :  { %v189_v57 = vsel %vm188_vm1, %v186_v55, %v180_v56  ;;  %v190_v61 = vsel %vm188_vm1, %v187_v59, %v182_v60 }
  0xa2   :  { %728 = vmatmul.msk.f32.vlgmr.msra.gmra.mxu1 %vm249_vm2, %v189_v57  ;;  %732 = vmatmul.msk.f32.vlgmr.msra.gmra.mxu2 %vm249_vm2, %v189_v57 }
  0xa3   :  { %734 = vmatmul.msk.f32.vlgmr.msra.gmra.mxu3 %vm249_vm2, %v189_v57 }
  0xaa   :  { %729 = vmatmul.msk.f32.gmra.mxu1 %vm249_vm2, %v190_v61  ;;  %733 = vmatmul.msk.f32.gmra.mxu2 %vm249_vm2, %v190_v61 }
  0xab   :  { %735 = vmatmul.msk.f32.gmra.mxu3 %vm249_vm2, %v190_v61 }
  0xb2   :  { %730 = vmatmul.msk.f32.vlgmr.msrb.gmra.mxu1 %vm249_vm2, %v189_v57 }
  0xba   :  { %731 = vmatmul.msk.f32.gmra.mxu1 %vm249_vm2, %v190_v61 }
 0x11f   :  { %v273_v62 = vpop.f32.mrf.mxu1 }
 0x120   :  { %v274_v11 = vadd.f32 %v273_v62, %v241_v5 }
 0x125   :  { %v319_v9 = vpop.f32.mrf.mxu2 }
 0x126   :  { %v342_v1 = vpop.f32.mrf.mxu3  ;;  %v320_v14 = vadd.f32 %v319_v9, %v243_v12  ;;  %v658_v9 = vld [vmem:[#allocation14 + $0x50] sm:$0xff] }
 0x127   :  { %v343_v2 = vadd.f32 %v342_v1, %v244_v0  ;;  %v276_v3 = vpop.f32.mrf.mxu1 }
 0x128   :  { %v277_v18 = vadd.f32 %v276_v3, %v241_v5  ;;  %v662_v5 = vld [vmem:[#allocation14 + $0x70] sm:$0xff] }
 0x129   :  { %587 = vadd.xlane.f32.xlu2 %v343_v2  ;;  %669 = vmatpush.msra.mxu0 %v662_v5 }
 0x12d   :  { %v322_v19 = vpop.f32.mrf.mxu2 }
 0x12e   :  { %v345_v6 = vpop.f32.mrf.mxu3  ;;  %v323_v21 = vadd.f32 %v322_v19, %v243_v12  ;;  %v655_v12 = vld [vmem:[#allocation14 + $0x38] sm:$0xff] }
 0x12f   :  { %v346_v7 = vadd.f32 %v345_v6, %v244_v0  ;;  %v296_v8 = vpop.f32.mrf.mxu1  ;;  %v661_v6 = vld [vmem:[#allocation14 + $0x68] sm:$0xff] }
 0x130   :  { %v297_v10 = vadd.f32 %v296_v8, %v242_v4  ;;  %670 = vmatpush.msra.mxu0 %v661_v6  ;;  %v659_v8 = vld [vmem:[#allocation14 + $0x58] sm:$0xff] }
 0x131   :  { %589 = vadd.xlane.f32.xlu2 %v346_v7 }
 0x132   :  { %v379_v13 = vadd.f32 %v297_v10, %v274_v11 }
 0x134   :  { %v380_v16 = vadd.f32 %v379_v13, %v320_v14  ;;  %v654_v13 = vld [vmem:[#allocation14 + $0x30] sm:$0xff] }
 0x137   :  { %v299_v15 = vpop.f32.mrf.mxu1 }
 0x138   :  { %v300_v17 = vadd.f32 %v299_v15, %v242_v4  ;;  %v652_v15 = vld [vmem:[#allocation14 + $0x20] sm:$0xff] }
 0x139   :  { %381 = vadd.xlane.f32.xlu2 %v380_v16  ;;  %v651_v16 = vld [vmem:[#allocation14 + $0x18] sm:$0xff] }
 0x13a   :  { %v383_v20 = vadd.f32 %v300_v17, %v277_v18 }
 0x13c   :  { %v384_v22 = vadd.f32 %v383_v20, %v323_v21 }
 0x141   :  { %385 = vadd.xlane.f32.xlu2 %v384_v22 }
 0x19c   :  { %v588_v30 = vpop.xlane.xlu2 %587 }
 0x19d   :  { %v598_v31 = vmul.f32 %v1148_v29, %v588_v30 }
 0x19f   :  { %v1151_v32 = vsub.f32 %v343_v2, %v598_v31 }
 0x1a1   :  { %v602_v34 = vmul.f32 %v1151_v32, %v1151_v32 }
 0x1a3   :  { %604 = vadd.xlane.f32.xlu0 %v602_v34 }
 0x1a4   :  { %v590_v35 = vpop.xlane.xlu2 %589 }
 0x1a5   :  { %v599_v37 = vmul.f32 %v1148_v29, %v590_v35 }
 0x1a7   :  { %v1156_v38 = vsub.f32 %v346_v7, %v599_v37  ;;  %v660_v7 = vld [vmem:[#allocation14 + $0x60] sm:$0xff] }
 0x1a8   :  { %671 = vmatpush.msra.mxu0 %v660_v7 }
 0x1a9   :  { %v603_v40 = vmul.f32 %v1156_v38, %v1156_v38 }
 0x1aa   :  { %672 = vmatpush.msra.mxu0 %v659_v8  ;;  %v445_v8 = vld [vmem:[#allocation11] sm:$0x7] }
 0x1ab   :  { %606 = vadd.xlane.f32.xlu1 %v603_v40  ;;  %v760_v40 = vld [vmem:[%s1319_s9] ss:$0 sm:$0xff] }
 0x1ac   :  { %v382_v41 = vpop.xlane.xlu2 %381  ;;  %673 = vmatpush.msra.mxu0 %v658_v9 }
 0x1ad   :  { %v387_v43 = vmul.f32 0.010416667, %v382_v41 }
 0x1af   :  { %v1160_v45 = vsub.f32 %v274_v11, %v387_v43  ;;  %v1162_v46 = vsub.f32 %v297_v10, %v387_v43  ;;  %v1164_v47 = vsub.f32 %v320_v14, %v387_v43  ;;  %v657_v10 = vld [vmem:[#allocation14 + $0x48] sm:$0xff]  ;;  %v656_v11 = vld [vmem:[#allocation14 + $0x40] sm:$0xff] }
 0x1b0   :  { %674 = vmatpush.msra.mxu0 %v657_v10  ;;  %v653_v14 = vld [vmem:[#allocation14 + $0x28] sm:$0xff] }
 0x1b1   :  { %v395_v48 = vmul.f32 %v1160_v45, %v1160_v45  ;;  %v396_v49 = vmul.f32 %v1162_v46, %v1162_v46  ;;  %v397_v50 = vmul.f32 %v1164_v47, %v1164_v47 }
 0x1b2   :  { %675 = vmatpush.msra.mxu0 %v656_v11  ;;  %v448_v11 = vperm.slane %v445_v8, 1 }
 0x1b3   :  { %v401_v51 = vsel %vm352_vm4, %v395_v48, 0.0  ;;  %v402_v52 = vsel %vm359_vm5, %v396_v49, 0.0  ;;  %v403_v56 = vsel %vm372_vm6, %v397_v50, 0.0 }
 0x1b4   :  { %v386_v53 = vpop.xlane.xlu2 %385  ;;  %v407_v54 = vadd.f32 %v402_v52, %v401_v51  ;;  %676 = vmatpush.msra.mxu0 %v655_v12 }
 0x1b5   :  { %v388_v55 = vmul.f32 0.010416667, %v386_v53 }
 0x1b6   :  { %v408_v57 = vadd.f32 %v407_v54, %v403_v56  ;;  %677 = vmatpush.msra.mxu0 %v654_v13  ;;  %v459_v13 = vld [vmem:[#allocation13] sm:$0x7] }
 0x1b7   :  { %v1175_v58 = vsub.f32 %v277_v18, %v388_v55  ;;  %v1177_v59 = vsub.f32 %v300_v17, %v388_v55  ;;  %v1179_v60 = vsub.f32 %v323_v21, %v388_v55  ;;  %v650_v17 = vld [vmem:[#allocation14 + $0x10] sm:$0xff]  ;;  %v649_v18 = vld [vmem:[#allocation14 + $0x8] sm:$0xff]  ;;  %v648_v21 = vld [vmem:[#allocation14] sm:$0xff] }
 0x1b8   :  { %409 = vadd.xlane.f32.xlu2 %v408_v57  ;;  %678 = vmatpush.msra.mxu0 %v653_v14 }
 0x1b9   :  { %v398_v61 = vmul.f32 %v1175_v58, %v1175_v58  ;;  %v399_v62 = vmul.f32 %v1177_v59, %v1177_v59  ;;  %v400_v63 = vmul.f32 %v1179_v60, %v1179_v60 }
 0x1ba   :  { %679 = vmatpush.msra.mxu0 %v652_v15  ;;  %v447_v15 = vperm.slane %v445_v8, 0 }
 0x1bb   :  { %v404_v0 = vsel %vm352_vm4, %v398_v61, 0.0  ;;  %v405_v1 = vsel %vm359_vm5, %v399_v62, 0.0  ;;  %v406_v3 = vsel %vm372_vm6, %v400_v63, 0.0 }
 0x1bc   :  { %v411_v2 = vadd.f32 %v405_v1, %v404_v0  ;;  %680 = vmatpush.msra.mxu0 %v651_v16 }
 0x1be   :  { %v412_v4 = vadd.f32 %v411_v2, %v406_v3  ;;  %681 = vmatpush.msra.mxu0 %v650_v17  ;;  %v462_v17 = vperm.slane %v459_v13, 1 }
 0x1c0   :  { %413 = vadd.xlane.f32.xlu2 %v412_v4  ;;  %682 = vmatpush.msra.mxu0 %v649_v18 }
 0x1c2   :  { %683 = vmatpush.msra.mxu0 %v648_v21 }
 0x216   :  { %v605_v19 = vpop.xlane.xlu0 %604 }
 0x217   :  { %v608_v20 = vmul.f32 %v605_v19, %v1148_v29  ;;  %v449_v19 = vperm.slane %v445_v8, 2 }
 0x219   :  { %v610_v22 = vadd.f32 1e-06, %v608_v20 }
 0x21b   :  { %764 = vrsqrt.f32 %v610_v22  ;;  %vm618_vm8 = vweird.f32 %v610_v22 }
 0x21e   :  { %v607_v23 = vpop.xlane.xlu1 %606 }
 0x21f   :  { %v609_v24 = vmul.f32 %v607_v23, %v1148_v29 }
 0x221   :  { %v765_v25 = vpop.eup %764  ;;  %v611_v26 = vadd.f32 1e-06, %v609_v24 }
 0x222   :  { %v613_v27 = vmul.f32 %v765_v25, %v610_v22  ;;  %vm619_vm7 = vweird.f32 %v765_v25  ;;  %v461_v22 = vperm.slane %v459_v13, 0 }
 0x223   :  { %766 = vrsqrt.f32 %v611_v26  ;;  %vm620_vm9 = vmor %vm618_vm8, %vm619_vm7  ;;  %vm628_vm11 = vweird.f32 %v611_v26 }
 0x224   :  { %v614_v28 = vmul.f32 %v765_v25, %v613_v27 }
 0x226   :  { %v615_v30 = vmul.f32 0.5, %v614_v28 }
 0x228   :  { %v616_v31 = vsub.f32 1.5, %v615_v30 }
 0x229   :  { %v767_v33 = vpop.eup %766 }
 0x22a   :  { %v617_v34 = vmul.f32 %v765_v25, %v616_v31  ;;  %v623_v35 = vmul.f32 %v767_v33, %v611_v26  ;;  %vm629_vm10 = vweird.f32 %v767_v33 }
 0x22b   :  { %vm630_vm12 = vmor %vm628_vm11, %vm629_vm10  ;;  %v410_v54 = vpop.xlane.xlu2 %409 }
 0x22c   :  { %v624_v37 = vmul.f32 %v767_v33, %v623_v35  ;;  %v621_v39 = vsel %vm620_vm9, %v765_v25, %v617_v34  ;;  %v415_v55 = vmul.f32 0.010416667, %v410_v54 }
 0x22d   :  { %v632_v29 = vmul.f32 %v621_v39, %v1151_v32 }
 0x22e   :  { %v625_v41 = vmul.f32 0.5, %v624_v37  ;;  %v417_v56 = vadd.f32 1e-06, %v415_v55 }
 0x22f   :  { %v638_v42 = vmul.f32 %v759_v36, %v632_v29 }
 0x230   :  { %v626_v43 = vsub.f32 1.5, %v625_v41  ;;  %768 = vrsqrt.f32 %v417_v56  ;;  %vm425_vm14 = vweird.f32 %v417_v56 }
 0x231   :  { %v644_v44 = vadd.f32 %v760_v40, %v638_v42 }
 0x232   :  { %v627_v48 = vmul.f32 %v767_v33, %v626_v43 }
 0x233   :  { %v646_v49 = vmax.f32 %v644_v44, 0.0  ;;  %v414_v57 = vpop.xlane.xlu2 %413 }
 0x234   :  { %v631_v50 = vsel %vm630_vm12, %v767_v33, %v627_v48  ;;  %v416_v61 = vmul.f32 0.010416667, %v414_v57 }
 0x235   :  { %684 = vmatmul.f32.vlgmr.msra.gmra.mxu0 %v646_v49  ;;  %v633_v51 = vmul.f32 %v631_v50, %v1156_v38 }
 0x236   :  { %v418_v62 = vadd.f32 1e-06, %v416_v61  ;;  %v769_v63 = vpop.eup %768 }
 0x237   :  { %v639_v52 = vmul.f32 %v759_v36, %v633_v51  ;;  %v420_v0 = vmul.f32 %v769_v63, %v417_v56  ;;  %vm426_vm13 = vweird.f32 %v769_v63 }
 0x238   :  { %770 = vrsqrt.f32 %v418_v62  ;;  %vm427_vm15 = vmor %vm425_vm14, %vm426_vm13  ;;  %vm435_vm1 = vweird.f32 %v418_v62 }
 0x239   :  { %v645_v53 = vadd.f32 %v760_v40, %v639_v52  ;;  %v421_v1 = vmul.f32 %v769_v63, %v420_v0 }
 0x23b   :  { %v647_v32 = vmax.f32 %v645_v53, 0.0  ;;  %v422_v3 = vmul.f32 0.5, %v421_v1 }
 0x23d   :  { %687 = vmatmul.f32.gmra.mxu0 %v647_v32  ;;  %v423_v5 = vsub.f32 1.5, %v422_v3 }
 0x23e   :  { %v771_v2 = vpop.eup %770 }
 0x23f   :  { %v430_v4 = vmul.f32 %v771_v2, %v418_v62  ;;  %v424_v6 = vmul.f32 %v769_v63, %v423_v5  ;;  %vm436_vm0 = vweird.f32 %v771_v2 }
 0x240   :  { %vm437_vm2 = vmor %vm435_vm1, %vm436_vm0 }
 0x241   :  { %v431_v38 = vmul.f32 %v771_v2, %v430_v4  ;;  %v428_v9 = vsel %vm427_vm15, %v769_v63, %v424_v6 }
 0x242   :  { %v440_v12 = vmul.f32 %v428_v9, %v1162_v46  ;;  %v439_v16 = vmul.f32 %v428_v9, %v1160_v45  ;;  %v441_v20 = vmul.f32 %v428_v9, %v1164_v47  ;;  %v463_v46 = vperm.slane %v459_v13, 2 }
 0x243   :  { %v432_v7 = vmul.f32 0.5, %v431_v38 }
 0x244   :  { %v454_v18 = vmul.f32 %v448_v11, %v440_v12  ;;  %v453_v23 = vmul.f32 %v447_v15, %v439_v16  ;;  %v455_v26 = vmul.f32 %v449_v19, %v441_v20 }
 0x245   :  { %v433_v10 = vsub.f32 1.5, %v432_v7 }
 0x246   :  { %v468_v24 = vadd.f32 %v462_v17, %v454_v18  ;;  %v467_v27 = vadd.f32 %v461_v22, %v453_v23  ;;  %v469_v31 = vadd.f32 %v463_v46, %v455_v26 }
 0x247   :  { %v434_v14 = vmul.f32 %v771_v2, %v433_v10 }
 0x248   :  { %v737_v30 = vmul.f32 -1.442695, %v468_v24  ;;  %v736_v33 = vmul.f32 -1.442695, %v467_v27  ;;  %v738_v36 = vmul.f32 -1.442695, %v469_v31 }
 0x249   :  { %v438_v21 = vsel %vm437_vm2, %v771_v2, %v434_v14 }
 0x24a   :  { %v443_v25 = vmul.f32 %v438_v21, %v1177_v59  ;;  %v442_v28 = vmul.f32 %v438_v21, %v1175_v58  ;;  %v444_v34 = vmul.f32 %v438_v21, %v1179_v60  ;;  %772 = vpow2.f32 %v737_v30  ;;  %v761_v21 = vld [vmem:[%s1321_s11] ss:$0 sm:$0xff]  ;;  %s1038_s11 = smov [#allocation16]  }
 0x24b   :  { %774 = vpow2.f32 %v736_v33  ;;  %s709_s6 = sshll.u32 %s1038_s11, 4  ;;  %s710_s6 = int_to_ptr.vmem [resolvable:$true] %s709_s6 }
 0x24c   :  { %v457_v45 = vmul.f32 %v448_v11, %v443_v25  ;;  %v456_v35 = vmul.f32 %v447_v15, %v442_v28  ;;  %v458_v37 = vmul.f32 %v449_v19, %v444_v34  ;;  %776 = vpow2.f32 %v738_v36  ;;  %v691_v34 = vld [vmem:[#allocation8] sm:$0xff] }
 0x24e   :  { %v471_v47 = vadd.f32 %v462_v17, %v457_v45  ;;  %v470_v39 = vadd.f32 %v461_v22, %v456_v35  ;;  %v472_v40 = vadd.f32 %v463_v46, %v458_v37 }
 0x250   :  { %v740_v29 = vmul.f32 -1.442695, %v471_v47  ;;  %v773_v59 = vpop.eup %772  ;;  %v739_v41 = vmul.f32 -1.442695, %v470_v39  ;;  %v741_v43 = vmul.f32 -1.442695, %v472_v40 }
 0x251   :  { %v775_v42 = vpop.eup %774  ;;  %v492_v58 = vadd.f32 1.0, %v773_v59 }
 0x252   :  { %778 = vpow2.f32 %v740_v29  ;;  %v777_v44 = vpop.eup %776  ;;  %v491_v48 = vadd.f32 1.0, %v775_v42 }
 0x253   :  { %780 = vpow2.f32 %v739_v41  ;;  %v1206_v49 = vadd.f32 1.0, %v777_v44  ;;  %vm517_vm4 = vweird.f32 %v492_v58  ;;  %v521_v12 = vand.u32 2147483647, %v492_v58 }
 0x254   :  { %782 = vrcp.f32 %v492_v58  ;;  %v506_v8 = vand.u32 2147483647, %v491_v48  ;;  %v508_v9 = vand.u32 2147483648, %v491_v48  ;;  %v523_v13 = vand.u32 2147483648, %v492_v58 }
 0x255   :  { %784 = vpow2.f32 %v741_v43  ;;  %vm502_vm6 = vweird.f32 %v491_v48  ;;  %vm532_vm9 = vweird.f32 %v1206_v49  ;;  %vm522_vm12 = vcmp.eq.f32.partialorder %v521_v12, 8.507059e+37 }
 0x256   :  { %786 = vrcp.f32 %v491_v48  ;;  %vm1239_vm8 = vcmp.eq.f32.partialorder %v506_v8, 8.507059e+37  ;;  %v509_v24 = vor.u32 1.1754944e-38, %v508_v9  ;;  %v524_v25 = vor.u32 1.1754944e-38, %v523_v13 }
 0x257   :  { %788 = vrcp.f32 %v1206_v49  ;;  %v536_v45 = vand.u32 2147483647, %v1206_v49  ;;  %v538_v31 = vand.u32 2147483648, %v1206_v49 }
 0x258   :  { %v779_v60 = vpop.eup %778 }
 0x259   :  { %v781_v50 = vpop.eup %780  ;;  %v1208_v51 = vadd.f32 1.0, %v779_v60  ;;  %vm537_vm1 = vcmp.eq.f32.partialorder %v536_v45, 8.507059e+37  ;;  %v539_v43 = vor.u32 1.1754944e-38, %v538_v31 }
 0x25a   :  { %v783_v52 = vpop.eup %782  ;;  %v1211_v53 = vadd.f32 1.0, %v781_v50 }
 0x25b   :  { %v785_v32 = vpop.eup %784  ;;  %790 = vrcp.f32 %v1208_v51  ;;  %v513_v55 = vmul.f32 %v783_v52, %v492_v58  ;;  %vm518_vm3 = vweird.f32 %v783_v52  ;;  %vm562_vm13 = vweird.f32 %v1208_v51 }
 0x25c   :  { %v787_v54 = vpop.eup %786  ;;  %v1214_v56 = vadd.f32 1.0, %v785_v32  ;;  %792 = vrcp.f32 %v1211_v53  ;;  %vm1235_vm7 = vmor %vm517_vm4, %vm518_vm3  ;;  %v566_v37 = vand.u32 2147483647, %v1208_v51  ;;  %v568_v59 = vand.u32 2147483648, %v1208_v51 }
 0x25d   :  { %v1217_v57 = vpop.eup %788  ;;  %v498_v61 = vmul.f32 %v787_v54, %v491_v48  ;;  %v514_v62 = vsub.f32 1.0, %v513_v55  ;;  %vm503_vm5 = vweird.f32 %v787_v54  ;;  %v553_v44 = vand.u32 2147483648, %v1211_v53 }
 0x25e   :  { %794 = vrcp.f32 %v1214_v56  ;;  %v528_v0 = vmul.f32 %v1217_v57, %v1206_v49  ;;  %vm1250_vm10 = vmor %vm502_vm6, %vm503_vm5  ;;  %vm533_vm11 = vweird.f32 %v1217_v57  ;;  %vm547_vm3 = vweird.f32 %v1211_v53 }
 0x25f   :  { %v499_v1 = vsub.f32 1.0, %v498_v61  ;;  %v515_v3 = vmul.f32 %v783_v52, %v514_v62  ;;  %vm1264_vm14 = vmor %vm532_vm9, %vm533_vm11  ;;  %v551_v49 = vand.u32 2147483647, %v1211_v53  ;;  %vm567_vm5 = vcmp.eq.f32.partialorder %v566_v37, 8.507059e+37 }
 0x260   :  { %v529_v5 = vsub.f32 1.0, %v528_v0  ;;  %v583_v62 = vand.u32 2147483648, %v1214_v56  ;;  %v692_v0 = vld [vmem:[#allocation8 + $0x8] sm:$0xff] }
 0x261   :  { %v1219_v63 = vpop.eup %790  ;;  %v500_v38 = vmul.f32 %v787_v54, %v499_v1  ;;  %v516_v10 = vadd.f32 %v783_v52, %v515_v3  ;;  %v581_v1 = vand.u32 2147483647, %v1214_v56 }
 0x262   :  { %v1224_v2 = vpop.eup %792  ;;  %v558_v4 = vmul.f32 %v1219_v63, %v1208_v51  ;;  %v530_v14 = vmul.f32 %v1217_v57, %v529_v5  ;;  %vm563_vm15 = vweird.f32 %v1219_v63  ;;  %v569_v51 = vor.u32 1.1754944e-38, %v568_v59 }
 0x263   :  { %v543_v6 = vmul.f32 %v1224_v2, %v1211_v53  ;;  %v501_v15 = vadd.f32 %v787_v54, %v500_v38  ;;  %v520_v20 = vsel %vm1235_vm7, %v783_v52, %v516_v10  ;;  %vm548_vm0 = vweird.f32 %v1224_v2  ;;  %vm1283_vm2 = vmor %vm562_vm13, %vm563_vm15 }
 0x264   :  { %v1230_v7 = vpop.eup %794  ;;  %v559_v11 = vsub.f32 1.0, %v558_v4  ;;  %v531_v46 = vadd.f32 %v1217_v57, %v530_v14  ;;  %v525_v30 = vsel %vm522_vm12, %v524_v25, %v520_v20  ;;  %vm1294_vm4 = vmor %vm547_vm3, %vm548_vm0  ;;  %vm552_vm7 = vcmp.eq.f32.partialorder %v551_v49, 8.507059e+37 }
 0x265   :  { %v544_v16 = vsub.f32 1.0, %v543_v6  ;;  %v573_v17 = vmul.f32 %v1230_v7, %v1214_v56  ;;  %v505_v26 = vsel %vm1250_vm10, %v787_v54, %v501_v15  ;;  %v693_v40 = vmul.f32 %v691_v34, %v525_v30 }
 0x266   :  { %v560_v22 = vmul.f32 %v1219_v63, %v559_v11  ;;  %v510_v39 = vsel %vm1239_vm8, %v509_v24, %v505_v26  ;;  %v535_v29 = vsel %vm1264_vm14, %v1217_v57, %v531_v46  ;;  %vm578_vm6 = vweird.f32 %v1230_v7 }
 0x267   :  { %v545_v27 = vmul.f32 %v1224_v2, %v544_v16  ;;  %v574_v28 = vsub.f32 1.0, %v573_v17  ;;  %v540_v52 = vsel %vm537_vm1, %v539_v43, %v535_v29  ;;  %v554_v57 = vor.u32 1.1754944e-38, %v553_v44 }
 0x268   :  { %v561_v36 = vadd.f32 %v1219_v63, %v560_v22  ;;  %vm577_vm8 = vweird.f32 %v1214_v56  ;;  %v584_v6 = vor.u32 1.1754944e-38, %v583_v62  ;;  %vm582_vm10 = vcmp.eq.f32.partialorder %v581_v1, 8.507059e+37 }
 0x269   :  { %v546_v42 = vadd.f32 %v1224_v2, %v545_v27  ;;  %v575_v58 = vmul.f32 %v1230_v7, %v574_v28  ;;  %vm579_vm9 = vmor %vm577_vm8, %vm578_vm6 }
 0x26a   :  { %v565_v50 = vsel %vm1283_vm2, %v1219_v63, %v561_v36 }
 0x26b   :  { %v550_v55 = vsel %vm1294_vm4, %v1224_v2, %v546_v42  ;;  %v576_v53 = vadd.f32 %v1230_v7, %v575_v58  ;;  %v570_v61 = vsel %vm567_vm5, %v569_v51, %v565_v50 }
 0x26c   :  { %v555_v4 = vsel %vm552_vm7, %v554_v57, %v550_v55  ;;  %v694_v5 = vmul.f32 %v692_v0, %v570_v61 }
 0x26d   :  { %v580_v2 = vsel %vm579_vm9, %v1230_v7, %v576_v53 }
 0x26e   :  { %v585_v9 = vsel %vm582_vm10, %v584_v6, %v580_v2 }
 0x2b2   :  { %v685_v33 = vpop.f32.mrf.mxu0 }
 0x2b3   :  { %v686_v47 = vadd.f32 %v761_v21, %v685_v33 }
 0x2b5   :  { %v695_v41 = vmul.f32 %v686_v47, %v510_v39 }
 0x2b7   :  { %v697_v60 = vadd.f32 %v695_v41, %v693_v40 }
 0x2b9   :  { %v699_v54 = vmul.f32 %v697_v60, %v540_v52  ;;  %703 = vst [vmem:[#allocation16 + $0x8] sm:$0xff] %v697_v60 }
 0x2ba   :  { %v688_v63 = vpop.f32.mrf.mxu0 }
 0x2bb   :  { %701 = vst [vmem:[#allocation16] sm:$0xff] %v699_v54  ;;  %v689_v3 = vadd.f32 %v761_v21, %v688_v63 }
 0x2bd   :  { %v696_v38 = vmul.f32 %v689_v3, %v555_v4 }
 0x2bf   :  { %v698_v8 = vadd.f32 %v696_v38, %v694_v5 }
 0x2c1   :  { %v700_v56 = vmul.f32 %v698_v8, %v585_v9  ;;  %704 = vst [vmem:[#allocation16 + $0x18] sm:$0xff] %v698_v8 }
 0x2c3   :  { %702 = vst [vmem:[#allocation16 + $0x10] sm:$0xff] %v700_v56 }
 0x2c4   :  { %717 = dma.vmem_to_hbm [thread:$0]  %s710_s6, 512, %s712_s0, [#allocation4], %s1039_s27, %s1039_s27, %s1040_s28  }
 0x2c5   :  { %1022 = dma.done.wait [#allocation4], 512  }
 0x2c6   :  { %1023 = vsyncadd [#allocation4], 4294966784 }
 0x2c7   :  { %722 = vsyncpa [#allocation3], 1 }
 0x2c8   :  { %723 = vsyncpa [#allocation6], 1 }
 0x2c9   :  { %724 = vsyncpa [#allocation9], 1 }
 0x2ca   :  { %725 = vsyncpa [#allocation12], 1 }
 0x2cb   :  { %726 = vsyncpa [#allocation15], 1 }
 0x2cc   :  { %727 = vsyncpa [#allocation4], 1 }

</bundles_post_ra>
